<compile_context>
chip_gen: v7x
topology: tpu7x:2x2x1
jax: 0.10.0
libtpu: 0.0.40
codegen_flags: <defaults>
</compile_context>

<pallas_src>
import functools

import jax
import jax.numpy as jnp
from jax.experimental import pallas as pl
from jax.experimental.pallas import tpu as pltpu

_LN_EPS = 1e-5                     # spec uses plain nn.LayerNorm (default eps)


def _default_vmem_limit():
    """Generation-aware VMEM budget (v5e/v6e: 128 MiB, v7x: 64 MiB per TC)."""
    try:
        cap = getattr(pltpu.get_tpu_info(), "vmem_capacity_bytes", None)
    except Exception:  # pragma: no cover - conservative fallback
        cap = None
    if cap is None:
        return 48 * 1024 * 1024
    if cap >= 96 * 1024 * 1024:
        return 96 * 1024 * 1024        # v5e / v6e: use most of the 128 MiB
    return 40 * 1024 * 1024            # v7x: leave headroom under 64 MiB


_VMEM_LIMIT = _default_vmem_limit()

# MXU-friendly (>=256 preferred) tile candidates.  Rows are padded to a 256
# multiple in the wrappers, so the full-extent fallback only triggers on tiny
# dims (which are always legal block extents).
_ROW_TILES = (512, 256)
_COL_TILES = (512, 256, 128)
_K_TILES = (512, 256)


def _round_up(x, m):
    return ((x + m - 1) // m) * m


def _pick_tile(dim, candidates):
    """Largest candidate that evenly divides dim, else the full extent."""
    for c in candidates:
        if dim >= c and dim % c == 0:
            return c
    return dim


def _pad_rows(x, multiple):
    m = x.shape[0]
    mp = _round_up(m, multiple)
    if mp == m:
        return x
    return jnp.pad(x, ((0, mp - m), (0, 0)))


# ------------------------------------------------------------------ kernels --

def _linear_kernel(*refs, activation, has_residual):
    """Tiled matmul: acc += x_tile @ w_tile; epilogue adds bias (+gelu)(+residual)."""
    if has_residual:
        x_ref, w_ref, b_ref, r_ref, o_ref, acc_ref = refs
    else:
        x_ref, w_ref, b_ref, o_ref, acc_ref = refs
        r_ref = None

    @pl.when(pl.program_id(2) == 0)
    def _init():
        acc_ref[...] = jnp.zeros_like(acc_ref)

    acc_ref[...] += jnp.dot(x_ref[...], w_ref[...],
                            preferred_element_type=jnp.float32)

    @pl.when(pl.program_id(2) == pl.num_programs(2) - 1)
    def _finalize():
        y = acc_ref[...] + b_ref[...]
        if activation == "gelu":
            # TODO(synk): torch nn.GELU defaults to exact erf; tanh approx here.
            y = jax.nn.gelu(y, approximate=True)
        if has_residual:
            y = y + r_ref[...].astype(jnp.float32)
        o_ref[...] = y.astype(o_ref.dtype)


def _ln_linear_kernel(x_ref, g_ref, beta_ref, w_ref, b_ref, o_ref, h_ref, *,
                      eps, activation):
    """Fused LayerNorm -> matmul -> bias (+gelu).  LN is computed once per row
    tile (j == 0) into a bf16 VMEM scratch and reused for every column tile."""
    @pl.when(pl.program_id(1) == 0)
    def _normalize():
        x = x_ref[...].astype(jnp.float32)
        mu = jnp.mean(x, axis=-1, keepdims=True)
        xc = x - mu
        var = jnp.mean(xc * xc, axis=-1, keepdims=True)
        h = xc * jax.lax.rsqrt(var + eps) * g_ref[...] + beta_ref[...]
        h_ref[...] = h.astype(jnp.bfloat16)

    y = jnp.dot(h_ref[...], w_ref[...],
                preferred_element_type=jnp.float32) + b_ref[...]
    if activation == "gelu":
        # TODO(synk): torch nn.GELU defaults to exact erf; tanh approx here.
        y = jax.nn.gelu(y, approximate=True)
    o_ref[...] = y.astype(o_ref.dtype)


def _ln_kernel(x_ref, g_ref, b_ref, o_ref, *, eps):
    x = x_ref[...].astype(jnp.float32)
    mu = jnp.mean(x, axis=-1, keepdims=True)
    xc = x - mu
    var = jnp.mean(xc * xc, axis=-1, keepdims=True)
    o_ref[...] = (xc * jax.lax.rsqrt(var + eps) * g_ref[...]
                  + b_ref[...]).astype(o_ref.dtype)


def _attn_kernel(q_ref, k_ref, v_ref, o_ref, *, scale):
    """One (batch, head) pair per grid step; everything stays (N, dh)."""
    q = q_ref[0, 0] * scale                          # scale folded into q (N,dh)
    k = k_ref[0, 0]
    v = v_ref[0, 0]
    s = jax.lax.dot_general(q, k, (((1,), (1,)), ((), ())),
                            preferred_element_type=jnp.float32)
    s = s - jnp.max(s, axis=-1, keepdims=True)
    p = jnp.exp(s)
    inv = pl.reciprocal(jnp.sum(p, axis=-1, keepdims=True), approx=True)
    o_ref[0, 0] = jnp.dot((p * inv).astype(jnp.bfloat16), v,
                          preferred_element_type=jnp.float32).astype(o_ref.dtype)


# --------------------------------------------------------------- wrappers ----

def linear(x, w, b, residual=None, activation=None, out_dtype=jnp.bfloat16):
    """y = act(x @ w + b) (+ residual).  x:(M,K)->bf16, w:(K,N) bf16, b:(1,N) f32."""
    M0, K = x.shape
    N = w.shape[1]
    row_mult = 256 if M0 >= 256 else 8
    x = _pad_rows(x.astype(jnp.bfloat16), row_mult)
    if residual is not None:
        residual = _pad_rows(residual.astype(jnp.bfloat16), row_mult)
    M = x.shape[0]
    tm = _pick_tile(M, _ROW_TILES)
    tn = _pick_tile(N, _COL_TILES)
    tk = _pick_tile(K, _K_TILES)
    grid = (M // tm, N // tn, K // tk)

    in_specs = [pl.BlockSpec((tm, tk), lambda i, j, k: (i, k)),
                # TODO(synk): on v5e a third weight buffer
                # (pipeline_mode=pl.Buffered(3)) helps the thin proj/fc2 layers.
                pl.BlockSpec((tk, tn), lambda i, j, k: (k, j)),
                pl.BlockSpec((1, tn), lambda i, j, k: (0, j))]
    args = [x, w, b]
    if residual is not None:
        in_specs.append(pl.BlockSpec((tm, tn), lambda i, j, k: (i, j)))
        args.append(residual)

    bytes_accessed = (x.size * 2 + w.size * w.dtype.itemsize + b.size * 4
                      + M * N * jnp.dtype(out_dtype).itemsize
                      + (residual.size * 2 if residual is not None else 0))
    out = pl.pallas_call(
        functools.partial(_linear_kernel, activation=activation,
                          has_residual=residual is not None),
        grid=grid,
        in_specs=in_specs,
        out_specs=pl.BlockSpec((tm, tn), lambda i, j, k: (i, j)),
        out_shape=jax.ShapeDtypeStruct((M, N), out_dtype),
        scratch_shapes=[pltpu.VMEM((tm, tn), jnp.float32)],
        compiler_params=pltpu.CompilerParams(
            dimension_semantics=("parallel", "parallel", "arbitrary"),
            vmem_limit_bytes=_VMEM_LIMIT),
        cost_estimate=pl.CostEstimate(
            flops=int(2 * M * K * N),
            transcendentals=int(M * N if activation == "gelu" else 0),
            bytes_accessed=int(bytes_accessed)),
    )(*args)
    return out if M == M0 else out[:M0]


def ln_linear(x, g, beta, w, b, activation=None, eps=_LN_EPS,
              out_dtype=jnp.bfloat16):
    """Fused LayerNorm + linear (LN needs the whole feature dim per row tile)."""
    M0, K = x.shape
    N = w.shape[1]
    row_mult = 256 if M0 >= 256 else 8
    x = _pad_rows(x.astype(jnp.bfloat16), row_mult)
    M = x.shape[0]
    tm = _pick_tile(M, _ROW_TILES)
    tn = _pick_tile(N, _COL_TILES)
    grid = (M // tm, N // tn)
    bytes_accessed = (x.size * 2 + w.size * w.dtype.itemsize + 2 * K * 4
                      + N * 4 + M * N * jnp.dtype(out_dtype).itemsize)
    out = pl.pallas_call(
        functools.partial(_ln_linear_kernel, eps=eps, activation=activation),
        grid=grid,
        in_specs=[pl.BlockSpec((tm, K), lambda i, j: (i, 0)),
                  pl.BlockSpec((1, K), lambda i, j: (0, 0)),
                  pl.BlockSpec((1, K), lambda i, j: (0, 0)),
                  pl.BlockSpec((K, tn), lambda i, j: (0, j)),
                  pl.BlockSpec((1, tn), lambda i, j: (0, j))],
        out_specs=pl.BlockSpec((tm, tn), lambda i, j: (i, j)),
        out_shape=jax.ShapeDtypeStruct((M, N), out_dtype),
        scratch_shapes=[pltpu.VMEM((tm, K), jnp.bfloat16)],
        compiler_params=pltpu.CompilerParams(
            # j axis carries the LN scratch across column tiles -> "arbitrary"
            dimension_semantics=("parallel", "arbitrary"),
            vmem_limit_bytes=_VMEM_LIMIT),
        cost_estimate=pl.CostEstimate(
            flops=int(2 * M * K * N + 8 * M * K),
            transcendentals=int(M + (M * N if activation == "gelu" else 0)),
            bytes_accessed=int(bytes_accessed)),
    )(x, g, beta, w, b)
    return out if M == M0 else out[:M0]


def layernorm(x, g, b, eps=_LN_EPS, out_dtype=jnp.bfloat16):
    """Row-tiled standalone LayerNorm (encoder final norm)."""
    M0, D = x.shape
    row_mult = 256 if M0 >= 256 else 8
    x = _pad_rows(x.astype(jnp.bfloat16), row_mult)
    M = x.shape[0]
    tm = _pick_tile(M, _ROW_TILES)
    out = pl.pallas_call(
        functools.partial(_ln_kernel, eps=eps),
        grid=(M // tm,),
        in_specs=[pl.BlockSpec((tm, D), lambda i: (i, 0)),
                  pl.BlockSpec((1, D), lambda i: (0, 0)),
                  pl.BlockSpec((1, D), lambda i: (0, 0))],
        out_specs=pl.BlockSpec((tm, D), lambda i: (i, 0)),
        out_shape=jax.ShapeDtypeStruct((M, D), out_dtype),
        compiler_params=pltpu.CompilerParams(
            dimension_semantics=("parallel",),
            vmem_limit_bytes=_VMEM_LIMIT),
        cost_estimate=pl.CostEstimate(
            flops=int(8 * M * D), transcendentals=int(M),
            bytes_accessed=int(M * D * 4 + 2 * D * 4)),
    )(x, g, b)
    return out if M == M0 else out[:M0]


def attention(qkv, num_heads, dim):
    """qkv: (B, N, 3*dim) with last dim laid out as (3, H, dh) (timm layout).
    Heads are split in glue to head-major (B, H, N, dh) blocks; grid=(B, H)."""
    B, N, _ = qkv.shape
    dh = dim // num_heads
    qkv_h = jnp.transpose(qkv.reshape(B, N, 3, num_heads, dh), (2, 0, 3, 1, 4))
    q = qkv_h[0].astype(jnp.bfloat16)                # (B, H, N, dh)
    k = qkv_h[1].astype(jnp.bfloat16)
    v = qkv_h[2].astype(jnp.bfloat16)
    spec = pl.BlockSpec((1, 1, N, dh), lambda bi, hi: (bi, hi, 0, 0))
    out = pl.pallas_call(
        functools.partial(_attn_kernel, scale=dh ** -0.5),
        grid=(B, num_heads),
        in_specs=[spec, spec, spec],
        out_specs=spec,
        out_shape=jax.ShapeDtypeStruct((B, num_heads, N, dh), jnp.bfloat16),
        compiler_params=pltpu.CompilerParams(
            dimension_semantics=("parallel", "parallel"),
            vmem_limit_bytes=_VMEM_LIMIT),
        cost_estimate=pl.CostEstimate(
            flops=int(4 * B * num_heads * N * N * dh),
            transcendentals=int(B * num_heads * N * N),
            bytes_accessed=int(4 * B * num_heads * N * dh * 2)),
    )(q, k, v)
    return jnp.transpose(out, (0, 2, 1, 3)).reshape(B, N, dim)


# ------------------------------------------------------------- model parts ---

def transformer_block(x, p, num_heads):
    """Pre-norm ViT block (timm style): x + Attn(LN(x)); x + MLP(LN(x)).
    LN fused into qkv/fc1, residual fused into proj/fc2 epilogues."""
    B, N, D = x.shape
    x2 = x.reshape(B * N, D).astype(jnp.bfloat16)

    # LN1 -> qkv (fused), attention (per-head blocks), proj (+residual)
    qkv = ln_linear(x2, p["n1_g"], p["n1_b"], p["qkv_w"], p["qkv_b"])   # (B*N, 3D)
    a = attention(qkv.reshape(B, N, 3 * D), num_heads, D)               # (B, N, D)
    x2 = linear(a.reshape(B * N, D), p["proj_w"], p["proj_b"], residual=x2)

    # LN2 -> fc1 + GELU (fused), fc2 (+residual)
    h = ln_linear(x2, p["n2_g"], p["n2_b"], p["fc1_w"], p["fc1_b"],
                  activation="gelu")
    x2 = linear(h, p["fc2_w"], p["fc2_b"], residual=x2)
    return x2.reshape(B, N, D)


def encoder_forward(params, img, mask_key):
    """MAE-style ViT encoder with random masking. img: (B, C, H, W) NCHW."""
    B, C, H, W = img.shape
    p = params["patch_size"]
    Hn, Wn = H // p, W // p
    N = Hn * Wn
    D = params["patch_w"].shape[1]

    # patchify: NCHW -> (B, N, C*p*p), patch flattened in (C, p, p) order
    patches = img.reshape(B, C, Hn, p, Wn, p)
    patches = jnp.transpose(patches, (0, 2, 4, 1, 3, 5)).reshape(B, N, C * p * p)
    x = linear(patches.reshape(B * N, C * p * p),
               params["patch_w"], params["patch_b"]).reshape(B, N, D)
    x = x + params["enc_pos"][:, 1:, :]

    # random masking (MAE), deterministic key (plain JAX glue)
    len_keep = int(N * (1.0 - params["mask_ratio"]))
    noise = jax.random.uniform(mask_key, (B, N))
    ids_shuffle = jnp.argsort(noise, axis=1)
    ids_restore = jnp.argsort(ids_shuffle, axis=1)
    ids_keep = ids_shuffle[:, :len_keep]
    x = jnp.take_along_axis(
        x, jnp.broadcast_to(ids_keep[:, :, None], (B, len_keep, D)), axis=1)
    mask = jnp.ones((B, N), jnp.float32)
    mask = mask.at[:, :len_keep].set(0.0)
    mask = jnp.take_along_axis(mask, ids_restore, axis=1)

    cls = params["cls_token"] + params["enc_pos"][:, :1, :]
    x = jnp.concatenate([jnp.broadcast_to(cls, (B, 1, D)),
                         x.astype(jnp.float32)], axis=1)

    for blk in params["enc_blocks"]:
        x = transformer_block(x, blk, params["enc_heads"])
    L1 = len_keep + 1
    x = layernorm(x.reshape(B * L1, D),
                  params["enc_norm_g"], params["enc_norm_b"]).reshape(B, L1, D)
    return x, mask, ids_restore


def decoder_forward(params, latent, ids_restore):
    """ViTDecoder.forward."""
    B, L1, D = latent.shape
    Dd = params["dec_embed_w"].shape[1]
    N = ids_restore.shape[1]

    x = linear(latent.reshape(B * L1, D),
               params["dec_embed_w"], params["dec_embed_b"]).reshape(B, L1, Dd)
    x = x.astype(jnp.float32)

    n_mask = N + 1 - L1
    mask_tokens = jnp.broadcast_to(params["mask_token"], (B, n_mask, Dd))
    x_ = jnp.concatenate([x[:, 1:, :], mask_tokens], axis=1)            # (B, N, Dd)
    x_ = jnp.take_along_axis(
        x_, jnp.broadcast_to(ids_restore[:, :, None], (B, N, Dd)), axis=1)
    x = jnp.concatenate([x[:, :1, :], x_], axis=1)                      # (B, N+1, Dd)
    x = x + params["dec_pos"]

    for blk in params["dec_blocks"]:
        x = transformer_block(x, blk, params["dec_heads"])

    # decoder_norm fused into decoder_pred; final output kept in f32
    out = ln_linear(x.reshape(B * (N + 1), Dd),
                    params["dec_norm_g"], params["dec_norm_b"],
                    params["pred_w"], params["pred_b"],
                    out_dtype=jnp.float32)
    out = out.reshape(B, N + 1, -1)[:, 1:, :]                           # drop cls
    return out


def masked_vit_autoencoder_forward(params, img, mask_key):
    latent, masked, ids_restore = encoder_forward(params, img, mask_key)
    pred_img = decoder_forward(params, latent, ids_restore)
    return pred_img, masked, (params["patch_size"], params["patch_size"])


# ----------------------------------------------------------------- params ----

def init_params(key, *, img_size, patch_size, in_channels, embed_dim,
                dec_embed_dim, enc_layers, enc_heads, dec_layers, dec_heads,
                mlp_ratio, mask_ratio):
    keys = iter(jax.random.split(key, 256))
    nk = lambda: next(keys)

    def dense(fan_in, fan_out):
        # matmul weights stored bf16 (MXU operands / half HBM traffic); bias f32
        w = (jax.random.normal(nk(), (fan_in, fan_out), jnp.float32)
             * 0.02).astype(jnp.bfloat16)
        b = jnp.zeros((1, fan_out), jnp.float32)
        return w, b

    def block_params(dim):
        hidden = int(dim * mlp_ratio)
        qkv_w, qkv_b = dense(dim, 3 * dim)
        proj_w, proj_b = dense(dim, dim)
        fc1_w, fc1_b = dense(dim, hidden)
        fc2_w, fc2_b = dense(hidden, dim)
        return dict(
            n1_g=jnp.ones((1, dim), jnp.float32),
            n1_b=jnp.zeros((1, dim), jnp.float32),
            qkv_w=qkv_w, qkv_b=qkv_b, proj_w=proj_w, proj_b=proj_b,
            n2_g=jnp.ones((1, dim), jnp.float32),
            n2_b=jnp.zeros((1, dim), jnp.float32),
            fc1_w=fc1_w, fc1_b=fc1_b, fc2_w=fc2_w, fc2_b=fc2_b)

    num_patches = (img_size // patch_size) ** 2
    patch_dim = in_channels * patch_size * patch_size
    patch_w, patch_b = dense(patch_dim, embed_dim)
    dec_embed_w, dec_embed_b = dense(embed_dim, dec_embed_dim)
    pred_w, pred_b = dense(dec_embed_dim, patch_size * patch_size * in_channels)

    return dict(
        patch_size=patch_size, mask_ratio=mask_ratio,
        enc_heads=enc_heads, dec_heads=dec_heads,
        patch_w=patch_w, patch_b=patch_b,
        cls_token=jax.random.normal(nk(), (1, 1, embed_dim), jnp.float32) * 0.02,
        enc_pos=jax.random.normal(nk(), (1, num_patches + 1, embed_dim),
                                  jnp.float32) * 0.02,
        enc_blocks=[block_params(embed_dim) for _ in range(enc_layers)],
        enc_norm_g=jnp.ones((1, embed_dim), jnp.float32),
        enc_norm_b=jnp.zeros((1, embed_dim), jnp.float32),
        dec_embed_w=dec_embed_w, dec_embed_b=dec_embed_b,
        mask_token=jax.random.normal(nk(), (1, 1, dec_embed_dim),
                                     jnp.float32) * 0.02,
        dec_pos=jax.random.normal(nk(), (1, num_patches + 1, dec_embed_dim),
                                  jnp.float32) * 0.02,
        dec_blocks=[block_params(dec_embed_dim) for _ in range(dec_layers)],
        dec_norm_g=jnp.ones((1, dec_embed_dim), jnp.float32),
        dec_norm_b=jnp.zeros((1, dec_embed_dim), jnp.float32),
        pred_w=pred_w, pred_b=pred_b)


# ------------------------------------------------------------------- main ----

if __name__ == "__main__":
    key = jax.random.PRNGKey(0)
    pkey, ikey, mkey = jax.random.split(key, 3)

    # small config: 16x16 image, 4x4 patches -> 16 patches, dims 32, 2 layers, 4 heads
    params = init_params(
        pkey, img_size=16, patch_size=4, in_channels=3,
        embed_dim=32, dec_embed_dim=32,
        enc_layers=2, enc_heads=4,
        dec_layers=2, dec_heads=4,
        mlp_ratio=4.0, mask_ratio=0.75)

    img = jax.random.normal(ikey, (2, 3, 16, 16), jnp.float32)  # NCHW like PyTorch

    pred_img, masked, patch_size = masked_vit_autoencoder_forward(params, img, mkey)
    jax.block_until_ready((pred_img, masked))

    assert pred_img.shape == (2, 16, 4 * 4 * 3), pred_img.shape
    assert masked.shape == (2, 16), masked.shape
    assert patch_size == (4, 4)
    assert bool(jnp.all(jnp.isfinite(pred_img)))
    print("KERNEL_OK")
</pallas_src>

<mosaic_0001>
module attributes {stable_mosaic.version = 11 : i64} {
  func.func @_linear_kernel(%arg0: i32, %arg1: i32, %arg2: i32, %arg3: memref<32x48xbf16, #tpu.memory_space<vmem>>, %arg4: memref<48x32xbf16, #tpu.memory_space<vmem>>, %arg5: memref<1x32xf32, #tpu.memory_space<vmem>>, %arg6: memref<32x32xbf16, #tpu.memory_space<vmem>>, %arg7: memref<32x32xf32, #tpu.memory_space<vmem>>) attributes {dimension_semantics = [#tpu.dimension_semantics<parallel>, #tpu.dimension_semantics<parallel>, #tpu.dimension_semantics<arbitrary>], iteration_bounds = array<i64: 1, 1, 1>, scalar_prefetch = 0 : i64, scratch_operands = 1 : i64, tpu.core_type = #tpu.core_type<tc>, window_params = [{transform_indices = @transform_0, window_bounds = array<i64: 32, 48>}, {transform_indices = @transform_1, window_bounds = array<i64: 48, 32>}, {transform_indices = @transform_2, window_bounds = array<i64: 1, 32>}, {transform_indices = @transform_3, window_bounds = array<i64: 32, 32>}]} {
    %c0_i32 = arith.constant 0 : i32
    %0 = arith.cmpi eq, %arg2, %c0_i32 : i32
    %1 = arith.extui %0 : i1 to i32
    %c0_i32_0 = arith.constant 0 : i32
    %2 = arith.cmpi ne, %1, %c0_i32_0 : i32
    scf.if %2 {
      %cst_10 = arith.constant 0.000000e+00 : f32
      %12 = vector.broadcast %cst_10 : f32 to vector<32x32xf32>
      %c0_11 = arith.constant 0 : index
      %c0_12 = arith.constant 0 : index
      %13 = vector.load %arg7[%c0_11, %c0_12] : memref<32x32xf32, #tpu.memory_space<vmem>>, vector<32x32xf32>
      tpu.vector_store %arg7[%c0_11, %c0_12], %12 {strides = array<i32>} : memref<32x32xf32, #tpu.memory_space<vmem>>, vector<32x32xf32>,
    } else {
    }
    %c0 = arith.constant 0 : index
    %c0_1 = arith.constant 0 : index
    %3 = vector.load %arg7[%c0, %c0_1] : memref<32x32xf32, #tpu.memory_space<vmem>>, vector<32x32xf32>
    %c0_2 = arith.constant 0 : index
    %c0_3 = arith.constant 0 : index
    %4 = vector.load %arg3[%c0_2, %c0_3] : memref<32x48xbf16, #tpu.memory_space<vmem>>, vector<32x48xbf16>
    %c0_4 = arith.constant 0 : index
    %c0_5 = arith.constant 0 : index
    %5 = vector.load %arg4[%c0_4, %c0_5] : memref<48x32xbf16, #tpu.memory_space<vmem>>, vector<48x32xbf16>
    %cst = arith.constant dense<0.000000e+00> : vector<32x32xf32>
    %6 = tpu.matmul %4, %5, %cst {dimension_numbers = #tpu.dot_dimension_numbers<[1], [0], [0], [1], [0, 0, 1, 1], [], []>} : vector<32x48xbf16>, vector<48x32xbf16>, vector<32x32xf32> -> vector<32x32xf32>
    %7 = arith.addf %3, %6 : vector<32x32xf32>
    %c0_6 = arith.constant 0 : index
    %c0_7 = arith.constant 0 : index
    %8 = vector.load %arg7[%c0_6, %c0_7] : memref<32x32xf32, #tpu.memory_space<vmem>>, vector<32x32xf32>
    tpu.vector_store %arg7[%c0_6, %c0_7], %7 {strides = array<i32>} : memref<32x32xf32, #tpu.memory_space<vmem>>, vector<32x32xf32>,
    %c0_i32_8 = arith.constant 0 : i32
    %9 = arith.cmpi eq, %arg2, %c0_i32_8 : i32
    %10 = arith.extui %9 : i1 to i32
    %c0_i32_9 = arith.constant 0 : i32
    %11 = arith.cmpi ne, %10, %c0_i32_9 : i32
    scf.if %11 {
      %c0_10 = arith.constant 0 : index
      %c0_11 = arith.constant 0 : index
      %12 = vector.load %arg7[%c0_10, %c0_11] : memref<32x32xf32, #tpu.memory_space<vmem>>, vector<32x32xf32>
      %c0_12 = arith.constant 0 : index
      %c0_13 = arith.constant 0 : index
      %13 = vector.load %arg5[%c0_12, %c0_13] : memref<1x32xf32, #tpu.memory_space<vmem>>, vector<1x32xf32>
      %14 = vector.broadcast %13 : vector<1x32xf32> to vector<32x32xf32>
      %15 = arith.addf %12, %14 : vector<32x32xf32>
      %16 = arith.truncf %15 : vector<32x32xf32> to vector<32x32xbf16>
      %c0_14 = arith.constant 0 : index
      %c0_15 = arith.constant 0 : index
      %17 = vector.load %arg6[%c0_14, %c0_15] : memref<32x32xbf16, #tpu.memory_space<vmem>>, vector<32x32xbf16>
      tpu.vector_store %arg6[%c0_14, %c0_15], %16 {strides = array<i32>} : memref<32x32xbf16, #tpu.memory_space<vmem>>, vector<32x32xbf16>,
    } else {
    }
    return
  }
  func.func @transform_0(%arg0: i32, %arg1: i32, %arg2: i32) -> (i32, i32) {
    %c0_i32 = arith.constant 0 : i32
    return %arg0, %arg2 : i32, i32
  }
  func.func @transform_1(%arg0: i32, %arg1: i32, %arg2: i32) -> (i32, i32) {
    %c0_i32 = arith.constant 0 : i32
    return %arg2, %arg1 : i32, i32
  }
  func.func @transform_2(%arg0: i32, %arg1: i32, %arg2: i32) -> (i32, i32) {
    %c0_i32 = arith.constant 0 : i32
    %c0_i32_0 = arith.constant 0 : i32
    return %c0_i32, %arg1 : i32, i32
  }
  func.func @transform_3(%arg0: i32, %arg1: i32, %arg2: i32) -> (i32, i32) {
    %c0_i32 = arith.constant 0 : i32
    return %arg0, %arg1 : i32, i32
  }
}

</mosaic_0001>

<bundles_post_ra>
// kernel: tpu_custom_call.1
= control target key start
LH: loop header
LB: loop body
LE: loop exit
PB: predicated region body
PF: predicated region fallthrough
CT: control target
= control target key end

     0   :  { %vm20_vm0 = vcmask 261120   ;;  %vm67_vm1 = vcmask 392192   ;;  %v251_v3 = vmov 0.0   ;;  %s315_s0 = inlined_call_operand.vmem [shape: bf16[32,48], index: 0, kind: input, shape index: {}]   ;;  %s316_s1 = inlined_call_operand.vmem [shape: bf16[48,32], index: 1, kind: input, shape index: {}]   ;;  %s317_s2 = inlined_call_operand.vmem [shape: f32[1,32], index: 2, kind: input, shape index: {}]   ;;  %s318_s3 = inlined_call_operand.hbm [shape: bf16[32,32], index: 3, kind: output, shape index: {}]  }
   0x1   :  { %v222_v0 = vld [vmem:[%s316_s1] sm:$0xff]   ;;  %v223_v1 = vld [vmem:[%s316_s1 + $0x8] sm:$0xff]   ;;  %23 = vst.msk [vmem:[#allocation2 + $0x10] sm:$0xff] %vm20_vm0, %v251_v3  ;;  %21 = vst.msk [vmem:[#allocation2] sm:$0xff] %vm20_vm0, %v251_v3 }
   0x2   :  { %208 = vmatprep.subr.bf16.mxu0 %v222_v0  ;;  %v225_v2 = vld [vmem:[%s315_s0] sm:$0xff]   ;;  %22 = vst.msk [vmem:[#allocation2 + $0x8] sm:$0xff] %vm20_vm0, %v251_v3  ;;  %24 = vst.msk [vmem:[#allocation2 + $0x18] sm:$0xff] %vm20_vm0, %v251_v3  ;;  %v224_v4 = vld [vmem:[%s316_s1 + $0x10] sm:$0xff]  }
   0x3   :  { %209 = vmatpush3.bf16.msra.mxu0 %v222_v0  ;;  %214 = vmatprep.mubr.msk.bf16.mxu0 %vm67_vm1, %v225_v2 }
   0x4   :  { %210 = vmatprep.subr.bf16.mxu0 %v223_v1 }
   0x5   :  { %8 = vsyncpa [#allocation4], 0  ;;  %v226_v5 = vld [vmem:[%s315_s0 + $0x8] sm:$0xff]   ;;  %v194_v18 = vld [vmem:[%s317_s2] ss:$0 sm:$0xff]  ;;  %vm166_vm2 = vcmask 257024  }
   0x6   :  { %s252_s22 = smov [#allocation3]  }
   0x7   :  { %211 = vmatpush3.bf16.msra.mxu0 %v223_v1  ;;  %s176_s23 = sshll.u32 %s252_s22, 4  ;;  %s177_s23 = int_to_ptr.vmem [resolvable:$true] %s176_s23 }
   0x8   :  { %212 = vmatprep.subr.bf16.mxu0 %v224_v4  ;;  %v27_v6 = vld [vmem:[#allocation2 + $0x10] sm:$0xff]  ;;  %v25_v7 = vld [vmem:[#allocation2] sm:$0xff]  ;;  %s227_s2 = scalar_lea.vmem %s177_s23, 256  ;;  %p232_p1 = scmp.lt.s32.totalorder %s177_s23, %s177_s23 }
   0x9   :  { %v28_v9 = vld [vmem:[#allocation2 + $0x18] sm:$0xff]  ;;  %v26_v12 = vld [vmem:[#allocation2 + $0x8] sm:$0xff]  ;;  %p228_p0 = scmp.ne.s32.totalorder %s177_s23, %s227_s2  ;;  %p233_p2 = scmp.lt.s32.totalorder %s227_s2, %s227_s2 }
   0xb   :  { %213 = vmatpush3.bf16.msra.mxu0 %v224_v4  ;;  %p234_p3 = por %p233_p2, %p232_p1 }
   0xd   :  { %p235_p4 = pnand %p234_p3, %p228_p0 }
   0xe   :  { %215 = vmatmul.mubr.msk.bf16.vlgmr.msra.gmra.mrb[0].mxu0 %vm67_vm1, %v226_v5 }
  0xe1   :  { %v216_v8 = vpop.f32.mrb[0].mxu0 }
  0xe2   :  { %v125_v10 = vadd.f32 %v216_v8, %v27_v6  ;;  %v108_v11 = vpop.f32.mrb[1].mxu0 }
  0xe3   :  { %v123_v13 = vadd.f32 %v108_v11, %v25_v7  ;;  %v217_v14 = vpop.f32.mrb[2].mxu0 }
  0xe4   :  { %130 = vst.msk [vmem:[#allocation2 + $0x10] sm:$0xff] %vm20_vm0, %v125_v10  ;;  %v126_v15 = vadd.f32 %v217_v14, %v28_v9  ;;  %v111_v16 = vpop.f32.mrb[3].mxu0 }
  0xe5   :  { %128 = vst.msk [vmem:[#allocation2] sm:$0xff] %vm20_vm0, %v123_v13  ;;  %v124_v17 = vadd.f32 %v111_v16, %v26_v12 }
  0xe6   :  { %131 = vst.msk [vmem:[#allocation2 + $0x18] sm:$0xff] %vm20_vm0, %v126_v15 }
  0xe7   :  { %129 = vst.msk [vmem:[#allocation2 + $0x8] sm:$0xff] %vm20_vm0, %v124_v17 }
  0xeb   :  { %v137_v19 = vld [vmem:[#allocation2 + $0x10] sm:$0xff] }
  0xec   :  { %v135_v20 = vld [vmem:[#allocation2] sm:$0xff]  ;;  %v148_v21 = vadd.f32 %v194_v18, %v137_v19 }
  0xed   :  { %v138_v22 = vld [vmem:[#allocation2 + $0x18] sm:$0xff]  ;;  %v146_v23 = vadd.f32 %v194_v18, %v135_v20 }
  0xee   :  { %v136_v24 = vld [vmem:[#allocation2 + $0x8] sm:$0xff]  ;;  %v149_v25 = vadd.f32 %v194_v18, %v138_v22  ;;  %v201_v26 = vpack.c.bf16 %v148_v21, %v148_v21 }
  0xef   :  { %v147_v27 = vadd.f32 %v194_v18, %v136_v24  ;;  %v199_v28 = vpack.c.bf16 %v146_v23, %v146_v23 }
  0xf0   :  { %v202_v29 = vpack.c.bf16 %v149_v25, %v149_v25  ;;  %169 = vst.msk [vmem:[#allocation3 + $0x8] sm:$0xf] %vm166_vm2, %v201_v26 }
  0xf1   :  { %v200_v30 = vpack.c.bf16 %v147_v27, %v147_v27  ;;  %167 = vst.msk [vmem:[#allocation3] sm:$0xf] %vm166_vm2, %v199_v28 }
  0xf2   :  { %170 = vst.msk [vmem:[#allocation3 + $0xc] sm:$0xf] %vm166_vm2, %v202_v29 }
  0xf3   :  { %168 = vst.msk [vmem:[#allocation3 + $0x4] sm:$0xf] %vm166_vm2, %v200_v30 }
  0xf4   :  { %238 = shalt.err (!%p235_p4)
}
  0xf5   :  { %s239_s26 = scalar_lea.hbm %s318_s3, 256 }
  0xf6   :  { %p240_p5 = scmp.ne.s32.totalorder %s318_s3, %s239_s26  ;;  %p243_p6 = scmp.lt.u32.totalorder %s239_s26, %s318_s3 }
  0xf8   :  { %p245_p7 = pnand %p243_p6, %p240_p5 }
  0xfa   :  { %248 = shalt.err (!%p245_p7)
}
  0xfb   :  { %s253_s4 = smov 64   ;;  %s254_s5 = smov 4  }
  0xfc   :  { %182 = dma.vmem_to_hbm [thread:$0]  %s177_s23, 256, %s318_s3, [#allocation4], %s253_s4, %s253_s4, %s254_s5  }
  0xfd   :  { %249 = dma.done.wait [#allocation4], 256  }
  0xfe   :  { %250 = vsyncadd [#allocation4], 4294967040 }
  0xff   :  { %186 = vsyncpa [#allocation4], 1 }

</bundles_post_ra>
